<compile_context>
chip_gen: v6e
topology: v6e:2x2x1
jax: 0.10.0
libtpu: 0.0.40
codegen_flags: <defaults>
</compile_context>

<pallas_src>
import numpy as np
import jax
import jax.numpy as jnp
from jax.experimental import pallas as pl
from jax.experimental.pallas import tpu as pltpu


def _round_up(a, b):
    return ((a + b - 1) // b) * b


# ----------------------------------------------------------------------------
# Kernel 1: row-parallel fused projections (hoisted off the serial path).
#   xfs = x @ [W_fb|W_sb] + [e_f|e_s]   (TM, 2H)
#   xi  = x @ W_ib + e_i                (TM, H)
#   a   = f_ch1 @ E_full + e_o          (TM, D)
# ----------------------------------------------------------------------------
def _projection_kernel(x_ref, f_ref, wfsb_ref, efs_ref, wib_ref, ei_ref,
                       efull_ref, eo_ref, xfs_ref, xi_ref, a_ref):
    x = x_ref[...]
    f = f_ref[...]
    xfs_ref[...] = (jnp.dot(x, wfsb_ref[...],
                            preferred_element_type=jnp.float32) + efs_ref[...])
    xi_ref[...] = (jnp.dot(x, wib_ref[...],
                           preferred_element_type=jnp.float32) + ei_ref[...])
    a_ref[...] = (jnp.dot(f, efull_ref[...],
                          preferred_element_type=jnp.float32) + eo_ref[...])


# ----------------------------------------------------------------------------
# Kernel 2: fused sequential recurrence + output epilogue.
#   Hidden state lives in VMEM scratch across the (sequential) time-chunk grid.
#   Per step only the recurrent matmuls remain: h @ [W_fa|W_sa], (h*m) @ W_ia,
#   and the output h @ W_ba; the x / f projections are streamed in precomputed.
# ----------------------------------------------------------------------------
def _fused_recurrence_kernel(xfs_ref, xi_ref, a_ref, wfsa_ref, wia_ref,
                             wba_ref, out_ref, h_ref):
    H = h_ref.shape[1]

    @pl.when(pl.program_id(0) == 0)
    def _():
        h_ref[...] = jnp.zeros_like(h_ref)          # h_init = zeros

    def step(t, carry):
        h = h_ref[...]                              # (Bp, H)
        gates = jax.nn.sigmoid(
            xfs_ref[t]
            + jnp.dot(h, wfsa_ref[...], preferred_element_type=jnp.float32))
        forget = gates[:, :H]
        modulator = gates[:, H:]
        candidate = jnp.tanh(
            xi_ref[t]
            + jnp.dot(h * modulator, wia_ref[...],
                      preferred_element_type=jnp.float32))
        h_new = h * (1.0 - forget) + forget * candidate
        h_ref[...] = h_new
        out_ref[t] = jax.nn.sigmoid(
            jnp.dot(h_new, wba_ref[...], preferred_element_type=jnp.float32)
            + a_ref[t])
        return carry

    jax.lax.fori_loop(0, xfs_ref.shape[0], step, 0, unroll=True)


# ----------------------------------------------------------------------------
# One-time parameter preparation (hoisted out of the forward path).
# ----------------------------------------------------------------------------
def prepare_params(params, discount_mask, feature_dim):
    D, H = params["W_fb"].shape
    idx = np.nonzero(np.asarray(discount_mask, dtype=bool))[0]
    E = params["E"].astype(jnp.float32)
    assert E.shape[0] == idx.size, "discount_dim does not match mask"

    def f32(name):
        return params[name].astype(jnp.float32)

    # Fuse the boolean-mask gather: f_ch1 @ E_full == f_ch1[:, mask] @ E.
    E_full = jnp.zeros((feature_dim, D), jnp.float32).at[idx].set(E)
    return {
        "W_fsb": jnp.concatenate([f32("W_fb"), f32("W_sb")], axis=1),   # (D, 2H)
        "e_fs": jnp.concatenate([f32("e_f"), f32("e_s")]).reshape(1, 2 * H),
        "W_ib": f32("W_ib"),                                            # (D, H)
        "e_i": f32("e_i").reshape(1, H),
        "W_fsa": jnp.concatenate([f32("W_fa"), f32("W_sa")], axis=1),   # (H, 2H)
        "W_ia": f32("W_ia"),                                            # (H, H)
        "W_ba": f32("W_ba"),                                            # (H, D)
        "E_full": E_full,                                               # (F, D)
        "e_o": f32("e_o").reshape(1, D),
    }


# ----------------------------------------------------------------------------
# Full forward.
# ----------------------------------------------------------------------------
def basket_gru_mi2_forward(x, f, prepped, *, time_chunk=8):
    """x: (B,T,D) float32; f: (B,T,C,F) float32; prepped: prepare_params(...).
    Returns (B, T, D) float32."""
    B, T, D = x.shape
    Fd = f.shape[-1]
    _, H = prepped["W_ib"].shape
    assert prepped["E_full"].shape[0] == Fd

    Bp = _round_up(max(B, 8), 8)                    # sublane-friendly batch pad
    TT = min(time_chunk, T)                         # time steps per grid iter
    Tp = _round_up(T, TT)

    # One padding pass each over x and f (time-major, padded batch).
    x_tm = jnp.zeros((Tp, Bp, D), jnp.float32).at[:T, :B].set(
        jnp.transpose(x.astype(jnp.float32), (1, 0, 2)))
    f_tm = jnp.zeros((Tp, Bp, Fd), jnp.float32).at[:T, :B].set(
        jnp.transpose(f[:, :, 1, :].astype(jnp.float32), (1, 0, 2)))

    M = Tp * Bp
    TM = TT * Bp                                    # projection row tile (| M)

    cost = pl.CostEstimate(
        flops=2 * M * (D * 3 * H + Fd * D),
        transcendentals=0,
        bytes_accessed=4 * (M * (D + Fd + 3 * H + D)
                            + D * 3 * H + Fd * D + 3 * H + D),
    )

    # --- Kernel 1: parallel projections over all (time, batch) rows. ---
    xfs2, xi2, a2 = pl.pallas_call(
        _projection_kernel,
        out_shape=(jax.ShapeDtypeStruct((M, 2 * H), jnp.float32),
                   jax.ShapeDtypeStruct((M, H), jnp.float32),
                   jax.ShapeDtypeStruct((M, D), jnp.float32)),
        grid_spec=pltpu.PrefetchScalarGridSpec(
            num_scalar_prefetch=0,
            grid=(M // TM,),
            in_specs=[
                pl.BlockSpec((TM, D), lambda i: (i, 0)),
                pl.BlockSpec((TM, Fd), lambda i: (i, 0)),
                pl.BlockSpec((D, 2 * H), lambda i: (0, 0)),
                pl.BlockSpec((1, 2 * H), lambda i: (0, 0)),
                pl.BlockSpec((D, H), lambda i: (0, 0)),
                pl.BlockSpec((1, H), lambda i: (0, 0)),
                pl.BlockSpec((Fd, D), lambda i: (0, 0)),
                pl.BlockSpec((1, D), lambda i: (0, 0)),
            ],
            out_specs=[
                pl.BlockSpec((TM, 2 * H), lambda i: (i, 0)),
                pl.BlockSpec((TM, H), lambda i: (i, 0)),
                pl.BlockSpec((TM, D), lambda i: (i, 0)),
            ],
        ),
        compiler_params=pltpu.CompilerParams(
            dimension_semantics=("parallel",)),
        cost_estimate=cost,
    )(x_tm.reshape(M, D), f_tm.reshape(M, Fd),
      prepped["W_fsb"], prepped["e_fs"], prepped["W_ib"], prepped["e_i"],
      prepped["E_full"], prepped["e_o"])

    xfs = xfs2.reshape(Tp, Bp, 2 * H)
    xi = xi2.reshape(Tp, Bp, H)
    a = a2.reshape(Tp, Bp, D)

    # --- Kernel 2: sequential recurrence with fused output epilogue. ---
    out_tm = pl.pallas_call(
        _fused_recurrence_kernel,
        out_shape=jax.ShapeDtypeStruct((Tp, Bp, D), jnp.float32),
        grid_spec=pltpu.PrefetchScalarGridSpec(
            num_scalar_prefetch=0,
            grid=(Tp // TT,),
            in_specs=[
                pl.BlockSpec((TT, Bp, 2 * H), lambda i: (i, 0, 0)),
                pl.BlockSpec((TT, Bp, H), lambda i: (i, 0, 0)),
                pl.BlockSpec((TT, Bp, D), lambda i: (i, 0, 0)),
                pl.BlockSpec((H, 2 * H), lambda i: (0, 0)),
                pl.BlockSpec((H, H), lambda i: (0, 0)),
                pl.BlockSpec((H, D), lambda i: (0, 0)),
            ],
            out_specs=pl.BlockSpec((TT, Bp, D), lambda i: (i, 0, 0)),
            scratch_shapes=[pltpu.VMEM((Bp, H), jnp.float32)],
        ),
        compiler_params=pltpu.CompilerParams(
            dimension_semantics=("arbitrary",)),
    )(xfs, xi, a, prepped["W_fsa"], prepped["W_ia"], prepped["W_ba"])

    return jnp.transpose(out_tm[:T, :B, :], (1, 0, 2))


# ----------------------------------------------------------------------------
# Pure-JAX reference (mirrors the PyTorch loop) and a small self-test.
# ----------------------------------------------------------------------------
def _reference_forward(x, f, discount_mask, params):
    B, T, D = x.shape
    H = params["W_fa"].shape[0]
    idx = np.nonzero(np.asarray(discount_mask, dtype=bool))[0]
    hp = jax.lax.Precision.HIGHEST
    h = jnp.zeros((B, H), jnp.float32)
    outs = []
    for t in range(T):
        xt = x[:, t, :]
        dt = f[:, t, 1, :][:, idx]
        forget = jax.nn.sigmoid(jnp.dot(xt, params["W_fb"], precision=hp)
                                + jnp.dot(h, params["W_fa"], precision=hp)
                                + params["e_f"])
        modulator = jax.nn.sigmoid(jnp.dot(xt, params["W_sb"], precision=hp)
                                   + jnp.dot(h, params["W_sa"], precision=hp)
                                   + params["e_s"])
        candidate = jnp.tanh(jnp.dot(xt, params["W_ib"], precision=hp)
                             + jnp.dot(h * modulator, params["W_ia"], precision=hp)
                             + params["e_i"])
        h = h * (1.0 - forget) + forget * candidate
        At = jnp.dot(dt, params["E"], precision=hp)
        qt = jnp.dot(h, params["W_ba"], precision=hp)
        outs.append(jax.nn.sigmoid(qt + At + params["e_o"]))
    return jnp.stack(outs, axis=1)


if __name__ == "__main__":
    key = jax.random.PRNGKey(0)
    ks = jax.random.split(key, 14)

    B, T = 2, 8
    input_dim = 32      # D
    num_hidden = 32     # H
    F_dim = 16          # last dim of f
    C = 3               # f channels; channel index 1 is used

    mask_np = np.array([True, False] * (F_dim // 2), dtype=bool)   # 8 True
    discount_dim = int(mask_np.sum())

    def xavier(k, shape):
        limit = float(np.sqrt(6.0 / (shape[0] + shape[1])))
        return jax.random.uniform(k, shape, jnp.float32, -limit, limit)

    # Module parameters (biases given small non-zero values purely for a
    # stronger numerical check; the module itself inits them to zeros).
    params = {
        "W_fb": xavier(ks[0], (input_dim, num_hidden)),
        "W_fa": xavier(ks[1], (num_hidden, num_hidden)),
        "e_f": 0.1 * jax.random.normal(ks[2], (num_hidden,), jnp.float32),
        "W_sb": xavier(ks[3], (input_dim, num_hidden)),
        "W_sa": xavier(ks[4], (num_hidden, num_hidden)),
        "e_s": 0.1 * jax.random.normal(ks[5], (num_hidden,), jnp.float32),
        "W_ib": xavier(ks[6], (input_dim, num_hidden)),
        "W_ia": xavier(ks[7], (num_hidden, num_hidden)),
        "e_i": 0.1 * jax.random.normal(ks[8], (num_hidden,), jnp.float32),
        "W_ba": xavier(ks[9], (num_hidden, input_dim)),
        "e_o": 0.1 * jax.random.normal(ks[10], (input_dim,), jnp.float32),
        "E": xavier(ks[11], (discount_dim, input_dim)),
    }

    x = jax.random.normal(ks[12], (B, T, input_dim), jnp.float32)
    f = jax.random.normal(ks[13], (B, T, C, F_dim), jnp.float32)

    prepped = prepare_params(params, mask_np, F_dim)   # one-time prep (opt #10)
    out = basket_gru_mi2_forward(x, f, prepped)
    out = jax.block_until_ready(out)

    ref = _reference_forward(x, f, mask_np, params)
    assert out.shape == (B, T, input_dim)
    max_err = float(jnp.max(jnp.abs(out - ref)))
    assert max_err < 1e-4, f"max abs error {max_err}"

    print("KERNEL_OK")
</pallas_src>

<mosaic_0001>
module attributes {stable_mosaic.version = 11 : i64} {
  func.func @_projection_kernel(%arg0: i32, %arg1: memref<64x32xf32, #tpu.memory_space<vmem>>, %arg2: memref<64x16xf32, #tpu.memory_space<vmem>>, %arg3: memref<32x64xf32, #tpu.memory_space<vmem>>, %arg4: memref<1x64xf32, #tpu.memory_space<vmem>>, %arg5: memref<32x32xf32, #tpu.memory_space<vmem>>, %arg6: memref<1x32xf32, #tpu.memory_space<vmem>>, %arg7: memref<16x32xf32, #tpu.memory_space<vmem>>, %arg8: memref<1x32xf32, #tpu.memory_space<vmem>>, %arg9: memref<64x64xf32, #tpu.memory_space<vmem>>, %arg10: memref<64x32xf32, #tpu.memory_space<vmem>>, %arg11: memref<64x32xf32, #tpu.memory_space<vmem>>) attributes {dimension_semantics = [#tpu.dimension_semantics<parallel>], iteration_bounds = array<i64: 1>, scalar_prefetch = 0 : i64, scratch_operands = 0 : i64, tpu.core_type = #tpu.core_type<tc>, window_params = [{transform_indices = @transform_0, window_bounds = array<i64: 64, 32>}, {transform_indices = @transform_1, window_bounds = array<i64: 64, 16>}, {pipeline_mode = #tpu.pipeline_mode<synchronous>, transform_indices = @transform_2, window_bounds = array<i64: 32, 64>}, {pipeline_mode = #tpu.pipeline_mode<synchronous>, transform_indices = @transform_3, window_bounds = array<i64: 1, 64>}, {pipeline_mode = #tpu.pipeline_mode<synchronous>, transform_indices = @transform_4, window_bounds = array<i64: 32, 32>}, {pipeline_mode = #tpu.pipeline_mode<synchronous>, transform_indices = @transform_5, window_bounds = array<i64: 1, 32>}, {pipeline_mode = #tpu.pipeline_mode<synchronous>, transform_indices = @transform_6, window_bounds = array<i64: 16, 32>}, {pipeline_mode = #tpu.pipeline_mode<synchronous>, transform_indices = @transform_7, window_bounds = array<i64: 1, 32>}, {transform_indices = @transform_8, window_bounds = array<i64: 64, 64>}, {transform_indices = @transform_9, window_bounds = array<i64: 64, 32>}, {transform_indices = @transform_10, window_bounds = array<i64: 64, 32>}]} {
    %c0 = arith.constant 0 : index
    %c0_0 = arith.constant 0 : index
    %0 = vector.load %arg1[%c0, %c0_0] : memref<64x32xf32, #tpu.memory_space<vmem>>, vector<64x32xf32>
    %c0_1 = arith.constant 0 : index
    %c0_2 = arith.constant 0 : index
    %1 = vector.load %arg2[%c0_1, %c0_2] : memref<64x16xf32, #tpu.memory_space<vmem>>, vector<64x16xf32>
    %c0_3 = arith.constant 0 : index
    %c0_4 = arith.constant 0 : index
    %2 = vector.load %arg3[%c0_3, %c0_4] : memref<32x64xf32, #tpu.memory_space<vmem>>, vector<32x64xf32>
    %cst = arith.constant dense<0.000000e+00> : vector<64x64xf32>
    %3 = tpu.matmul %0, %2, %cst {dimension_numbers = #tpu.dot_dimension_numbers<[1], [0], [0], [1], [0, 0, 1, 1], [], []>} : vector<64x32xf32>, vector<32x64xf32>, vector<64x64xf32> -> vector<64x64xf32>
    %c0_5 = arith.constant 0 : index
    %c0_6 = arith.constant 0 : index
    %4 = vector.load %arg4[%c0_5, %c0_6] : memref<1x64xf32, #tpu.memory_space<vmem>>, vector<1x64xf32>
    %5 = vector.broadcast %4 : vector<1x64xf32> to vector<64x64xf32>
    %6 = arith.addf %3, %5 : vector<64x64xf32>
    %c0_7 = arith.constant 0 : index
    %c0_8 = arith.constant 0 : index
    %7 = vector.load %arg9[%c0_7, %c0_8] : memref<64x64xf32, #tpu.memory_space<vmem>>, vector<64x64xf32>
    tpu.vector_store %arg9[%c0_7, %c0_8], %6 {strides = array<i32>} : memref<64x64xf32, #tpu.memory_space<vmem>>, vector<64x64xf32>,
    %c0_9 = arith.constant 0 : index
    %c0_10 = arith.constant 0 : index
    %8 = vector.load %arg5[%c0_9, %c0_10] : memref<32x32xf32, #tpu.memory_space<vmem>>, vector<32x32xf32>
    %cst_11 = arith.constant dense<0.000000e+00> : vector<64x32xf32>
    %9 = tpu.matmul %0, %8, %cst_11 {dimension_numbers = #tpu.dot_dimension_numbers<[1], [0], [0], [1], [0, 0, 1, 1], [], []>} : vector<64x32xf32>, vector<32x32xf32>, vector<64x32xf32> -> vector<64x32xf32>
    %c0_12 = arith.constant 0 : index
    %c0_13 = arith.constant 0 : index
    %10 = vector.load %arg6[%c0_12, %c0_13] : memref<1x32xf32, #tpu.memory_space<vmem>>, vector<1x32xf32>
    %11 = vector.broadcast %10 : vector<1x32xf32> to vector<64x32xf32>
    %12 = arith.addf %9, %11 : vector<64x32xf32>
    %c0_14 = arith.constant 0 : index
    %c0_15 = arith.constant 0 : index
    %13 = vector.load %arg10[%c0_14, %c0_15] : memref<64x32xf32, #tpu.memory_space<vmem>>, vector<64x32xf32>
    tpu.vector_store %arg10[%c0_14, %c0_15], %12 {strides = array<i32>} : memref<64x32xf32, #tpu.memory_space<vmem>>, vector<64x32xf32>,
    %c0_16 = arith.constant 0 : index
    %c0_17 = arith.constant 0 : index
    %14 = vector.load %arg7[%c0_16, %c0_17] : memref<16x32xf32, #tpu.memory_space<vmem>>, vector<16x32xf32>
    %cst_18 = arith.constant dense<0.000000e+00> : vector<64x32xf32>
    %15 = tpu.matmul %1, %14, %cst_18 {dimension_numbers = #tpu.dot_dimension_numbers<[1], [0], [0], [1], [0, 0, 1, 1], [], []>} : vector<64x16xf32>, vector<16x32xf32>, vector<64x32xf32> -> vector<64x32xf32>
    %c0_19 = arith.constant 0 : index
    %c0_20 = arith.constant 0 : index
    %16 = vector.load %arg8[%c0_19, %c0_20] : memref<1x32xf32, #tpu.memory_space<vmem>>, vector<1x32xf32>
    %17 = vector.broadcast %16 : vector<1x32xf32> to vector<64x32xf32>
    %18 = arith.addf %15, %17 : vector<64x32xf32>
    %c0_21 = arith.constant 0 : index
    %c0_22 = arith.constant 0 : index
    %19 = vector.load %arg11[%c0_21, %c0_22] : memref<64x32xf32, #tpu.memory_space<vmem>>, vector<64x32xf32>
    tpu.vector_store %arg11[%c0_21, %c0_22], %18 {strides = array<i32>} : memref<64x32xf32, #tpu.memory_space<vmem>>, vector<64x32xf32>,
    return
  }
  func.func @transform_0(%arg0: i32) -> (i32, i32) {
    %c0_i32 = arith.constant 0 : i32
    %c0_i32_0 = arith.constant 0 : i32
    return %arg0, %c0_i32 : i32, i32
  }
  func.func @transform_1(%arg0: i32) -> (i32, i32) {
    %c0_i32 = arith.constant 0 : i32
    %c0_i32_0 = arith.constant 0 : i32
    return %arg0, %c0_i32 : i32, i32
  }
  func.func @transform_2(%arg0: i32) -> (i32, i32) {
    %c0_i32 = arith.constant 0 : i32
    %c0_i32_0 = arith.constant 0 : i32
    %c0_i32_1 = arith.constant 0 : i32
    return %c0_i32, %c0_i32_0 : i32, i32
  }
  func.func @transform_3(%arg0: i32) -> (i32, i32) {
    %c0_i32 = arith.constant 0 : i32
    %c0_i32_0 = arith.constant 0 : i32
    %c0_i32_1 = arith.constant 0 : i32
    return %c0_i32, %c0_i32_0 : i32, i32
  }
  func.func @transform_4(%arg0: i32) -> (i32, i32) {
    %c0_i32 = arith.constant 0 : i32
    %c0_i32_0 = arith.constant 0 : i32
    %c0_i32_1 = arith.constant 0 : i32
    return %c0_i32, %c0_i32_0 : i32, i32
  }
  func.func @transform_5(%arg0: i32) -> (i32, i32) {
    %c0_i32 = arith.constant 0 : i32
    %c0_i32_0 = arith.constant 0 : i32
    %c0_i32_1 = arith.constant 0 : i32
    return %c0_i32, %c0_i32_0 : i32, i32
  }
  func.func @transform_6(%arg0: i32) -> (i32, i32) {
    %c0_i32 = arith.constant 0 : i32
    %c0_i32_0 = arith.constant 0 : i32
    %c0_i32_1 = arith.constant 0 : i32
    return %c0_i32, %c0_i32_0 : i32, i32
  }
  func.func @transform_7(%arg0: i32) -> (i32, i32) {
    %c0_i32 = arith.constant 0 : i32
    %c0_i32_0 = arith.constant 0 : i32
    %c0_i32_1 = arith.constant 0 : i32
    return %c0_i32, %c0_i32_0 : i32, i32
  }
  func.func @transform_8(%arg0: i32) -> (i32, i32) {
    %c0_i32 = arith.constant 0 : i32
    %c0_i32_0 = arith.constant 0 : i32
    return %arg0, %c0_i32 : i32, i32
  }
  func.func @transform_9(%arg0: i32) -> (i32, i32) {
    %c0_i32 = arith.constant 0 : i32
    %c0_i32_0 = arith.constant 0 : i32
    return %arg0, %c0_i32 : i32, i32
  }
  func.func @transform_10(%arg0: i32) -> (i32, i32) {
    %c0_i32 = arith.constant 0 : i32
    %c0_i32_0 = arith.constant 0 : i32
    return %arg0, %c0_i32 : i32, i32
  }
}

</mosaic_0001>

<bundles_post_ra>
// kernel: tpu_custom_call.1
= control target key start
LH: loop header
LB: loop body
LE: loop exit
PB: predicated region body
PF: predicated region fallthrough
CT: control target
= control target key end

     0   :  { %vm60_vm0 = vcmask 261120   ;;  %s888_s0 = inlined_call_operand.vmem [shape: f32[64,32], index: 0, kind: input, shape index: {}]   ;;  %s889_s1 = inlined_call_operand.vmem [shape: f32[64,16], index: 1, kind: input, shape index: {}]   ;;  %s890_s2 = inlined_call_operand.vmem [shape: f32[32,64], index: 2, kind: input, shape index: {}]   ;;  %s891_s3 = inlined_call_operand.vmem [shape: f32[1,64], index: 3, kind: input, shape index: {}]   ;;  %s892_s4 = inlined_call_operand.vmem [shape: f32[32,32], index: 4, kind: input, shape index: {}]   ;;  %s893_s5 = inlined_call_operand.vmem [shape: f32[1,32], index: 5, kind: input, shape index: {}]   ;;  %s894_s6 = inlined_call_operand.vmem [shape: f32[16,32], index: 6, kind: input, shape index: {}]   ;;  %s895_s7 = inlined_call_operand.vmem [shape: f32[1,32], index: 7, kind: input, shape index: {}]   ;;  %s896_s8 = inlined_call_operand.hbm [shape: f32[64,64], index: 8, kind: output, shape index: {0}]   ;;  %s897_s9 = inlined_call_operand.vmem [shape: f32[64,32], index: 9, kind: output, shape index: {1}]   ;;  %s898_s10 = inlined_call_operand.vmem [shape: f32[64,32], index: 10, kind: output, shape index: {2}]  }
   0x1   :  { %v52_v0 = vld [vmem:[%s890_s2 + $0x18] sm:$0xff]  ;;  %v51_v1 = vld [vmem:[%s890_s2 + $0x10] sm:$0xff]  ;;  %v50_v2 = vld [vmem:[%s890_s2 + $0x8] sm:$0xff] }
   0x2   :  { %555 = vmatprep.subr.mxu0 %v52_v0  ;;  %611 = vmatprep.subr.mxu1 %v52_v0  ;;  %v49_v3 = vld [vmem:[%s890_s2] sm:$0xff]  ;;  %v34_v6 = vld [vmem:[%s888_s0 + $0x8] sm:$0xff]  ;;  %v202_v8 = vld [vmem:[%s892_s4 + $0x18] sm:$0xff] }
   0x3   :  { %556 = vmatpush3.msra.mxu0 %v52_v0  ;;  %615 = vmatpush3.msra.mxu1 %v52_v0  ;;  %v33_v4 = vld [vmem:[%s888_s0] sm:$0xff]  ;;  %v38_v7 = vld [vmem:[%s888_s0 + $0x28] sm:$0xff] }
   0x4   :  { %557 = vmatprep.subr.mxu0 %v51_v1  ;;  %612 = vmatprep.subr.mxu1 %v51_v1  ;;  %v37_v5 = vld [vmem:[%s888_s0 + $0x20] sm:$0xff]  ;;  %v324_v9 = vld [vmem:[%s894_s6 + $0x8] sm:$0xff] }
   0x5   :  { %558 = vmatpush3.msra.mxu0 %v51_v1  ;;  %616 = vmatpush3.msra.mxu1 %v51_v1 }
   0x6   :  { %559 = vmatprep.subr.mxu0 %v50_v2  ;;  %613 = vmatprep.subr.mxu1 %v50_v2 }
   0x7   :  { %560 = vmatpush3.msra.mxu0 %v50_v2  ;;  %617 = vmatpush3.msra.mxu1 %v50_v2 }
   0x8   :  { %561 = vmatprep.subr.mxu0 %v49_v3  ;;  %614 = vmatprep.subr.mxu1 %v49_v3 }
   0x9   :  { %562 = vmatpush3.msra.mxu0 %v49_v3  ;;  %618 = vmatpush3.msra.mxu1 %v49_v3 }
   0xa   :  { %16 = vsyncpa [#allocation3], 0  ;;  %563 = vmatprep.mubr.msk.f32.mxu0 %vm60_vm0, %v33_v4  ;;  %569 = vmatprep.mubr.msk.f32.mxu1 %vm60_vm0, %v37_v5  ;;  %v201_v10 = vld [vmem:[%s892_s4 + $0x10] sm:$0xff]  ;;  %v36_v13 = vld [vmem:[%s888_s0 + $0x18] sm:$0xff]  ;;  %vm332_vm1 = vcmask 130048   ;;  %vm190_vm2 = vcmask 523264  }
   0xb   :  { %564 = vmatmul.mubr.msk.f32.vlgmr.msra.gmra.mxu0 %vm60_vm0, %v34_v6  ;;  %570 = vmatmul.mubr.msk.f32.vlgmr.msra.gmra.mxu1 %vm60_vm0, %v38_v7  ;;  %v35_v11 = vld [vmem:[%s888_s0 + $0x10] sm:$0xff]  ;;  %v40_v14 = vld [vmem:[%s888_s0 + $0x38] sm:$0xff]  ;;  %v200_v15 = vld [vmem:[%s892_s4 + $0x8] sm:$0xff] }
   0xc   :  { %575 = vmatprep.subr.mxu1 %v202_v8  ;;  %595 = vmatprep.subr.mxu0 %v324_v9  ;;  %v39_v12 = vld [vmem:[%s888_s0 + $0x30] sm:$0xff]  ;;  %v323_v16 = vld [vmem:[%s894_s6] sm:$0xff]  ;;  %v42_v19 = vld [vmem:[%s889_s1 + $0x8] sm:$0xff] }
   0xd   :  { %576 = vmatpush3.msra.mxu1 %v202_v8  ;;  %596 = vmatpush3.msra.mxu0 %v324_v9  ;;  %v199_v17 = vld [vmem:[%s892_s4] sm:$0xff]  ;;  %v43_v20 = vld [vmem:[%s889_s1 + $0x10] sm:$0xff]  ;;  %v44_v21 = vld [vmem:[%s889_s1 + $0x18] sm:$0xff] }
   0xe   :  { %577 = vmatprep.subr.mxu1 %v201_v10  ;;  %566 = vmatprep.mubr.msk.f32.mxu0 %vm60_vm0, %v35_v11  ;;  %v41_v18 = vld [vmem:[%s889_s1] sm:$0xff]  ;;  %v46_v23 = vld [vmem:[%s889_s1 + $0x28] sm:$0xff]  ;;  %v47_v24 = vld [vmem:[%s889_s1 + $0x30] sm:$0xff] }
   0xf   :  { %572 = vmatprep.mubr.msk.f32.mxu1 %vm60_vm0, %v39_v12  ;;  %578 = vmatpush3.msra.mxu1 %v201_v10  ;;  %v45_v22 = vld [vmem:[%s889_s1 + $0x20] sm:$0xff]  ;;  %v48_v25 = vld [vmem:[%s889_s1 + $0x38] sm:$0xff]  ;;  %s644_s1 = smov [#allocation2]  }
  0x10   :  { %567 = vmatmul.mubr.msk.f32.gmra.mxu0 %vm60_vm0, %v36_v13  ;;  %573 = vmatmul.mubr.msk.f32.gmra.mxu1 %vm60_vm0, %v40_v14  ;;  %v494_v26 = vld [vmem:[%s891_s3] ss:$0 sm:$0xff]  ;;  %s475_s22 = sshll.u32 %s644_s1, 4  ;;  %s476_s22 = int_to_ptr.vmem [resolvable:$true] %s475_s22 }
  0x11   :  { %579 = vmatprep.subr.mxu1 %v200_v15  ;;  %597 = vmatprep.subr.mxu0 %v323_v16  ;;  %v503_v43 = vld [vmem:[%s893_s5] ss:$0 sm:$0xff]  ;;  %s622_s26 = scalar_lea.vmem %s476_s22, 1024  ;;  %p627_p1 = scmp.lt.s32.totalorder %s476_s22, %s476_s22 }
  0x12   :  { %580 = vmatpush3.msra.mxu1 %v200_v15  ;;  %598 = vmatpush3.msra.mxu0 %v323_v16  ;;  %v512_v44 = vld [vmem:[%s895_s7] ss:$0 sm:$0xff]  ;;  %p623_p0 = scmp.ne.s32.totalorder %s476_s22, %s622_s26  ;;  %p628_p2 = scmp.lt.s32.totalorder %s622_s26, %s622_s26 }
  0x13   :  { %581 = vmatprep.subr.mxu1 %v199_v17  ;;  %583 = vmatprep.mubr.msk.f32.mxu1 %vm60_vm0, %v33_v4 }
  0x14   :  { %582 = vmatpush3.msra.mxu1 %v199_v17  ;;  %599 = vmatprep.mubr.msk.f32.mxu0 %vm332_vm1, %v41_v18  ;;  %p629_p3 = por %p628_p2, %p627_p1 }
  0x15   :  { %584 = vmatmul.mubr.msk.f32.vlgmr.msra.gmra.mxu1 %vm60_vm0, %v34_v6  ;;  %600 = vmatmul.mubr.msk.f32.vlgmr.msra.gmra.mxu0 %vm332_vm1, %v42_v19 }
  0x16   :  { %586 = vmatprep.mubr.msk.f32.mxu1 %vm60_vm0, %v35_v11  ;;  %602 = vmatprep.mubr.msk.f32.mxu0 %vm332_vm1, %v43_v20  ;;  %p630_p4 = pnand %p629_p3, %p623_p0 }
  0x19   :  { %587 = vmatmul.mubr.msk.f32.gmra.mxu1 %vm60_vm0, %v36_v13  ;;  %603 = vmatmul.mubr.msk.f32.gmra.mxu0 %vm332_vm1, %v44_v21 }
  0x1a   :  { %589 = vmatprep.mubr.msk.f32.mxu1 %vm60_vm0, %v37_v5  ;;  %605 = vmatprep.mubr.msk.f32.mxu0 %vm332_vm1, %v45_v22 }
  0x1d   :  { %590 = vmatmul.mubr.msk.f32.gmra.mxu1 %vm60_vm0, %v38_v7  ;;  %606 = vmatmul.mubr.msk.f32.gmra.mxu0 %vm332_vm1, %v46_v23 }
  0x1e   :  { %592 = vmatprep.mubr.msk.f32.mxu1 %vm60_vm0, %v39_v12  ;;  %608 = vmatprep.mubr.msk.f32.mxu0 %vm332_vm1, %v47_v24 }
  0x21   :  { %593 = vmatmul.mubr.msk.f32.gmra.mxu1 %vm60_vm0, %v40_v14  ;;  %609 = vmatmul.mubr.msk.f32.gmra.mxu0 %vm332_vm1, %v48_v25 }
  0xcb   :  { %v565_v27 = vpop.f32.mrf.mxu0  ;;  %v571_v28 = vpop.f32.mrf.mxu1 }
  0xcc   :  { %v157_v29 = vadd.f32 %v565_v27, %v494_v26  ;;  %v177_v30 = vadd.f32 %v571_v28, %v494_v26 }
  0xcd   :  { %v151_v31 = vpop.f32.mrf.mxu0  ;;  %v171_v32 = vpop.f32.mrf.mxu1 }
  0xce   :  { %192 = vst.msk [vmem:[#allocation2 + $0x8] sm:$0xff] %vm190_vm2, %v157_v29  ;;  %196 = vst.msk [vmem:[#allocation2 + $0x28] sm:$0xff] %vm190_vm2, %v177_v30  ;;  %v152_v33 = vadd.f32 %v494_v26, %v151_v31  ;;  %v172_v34 = vadd.f32 %v494_v26, %v171_v32 }
  0xd0   :  { %191 = vst.msk [vmem:[#allocation2] sm:$0xff] %vm190_vm2, %v152_v33  ;;  %195 = vst.msk [vmem:[#allocation2 + $0x20] sm:$0xff] %vm190_vm2, %v172_v34  ;;  %v568_v35 = vpop.f32.mrf.mxu0  ;;  %v574_v36 = vpop.f32.mrf.mxu1 }
  0xd1   :  { %v167_v37 = vadd.f32 %v568_v35, %v494_v26  ;;  %v187_v38 = vadd.f32 %v574_v36, %v494_v26 }
  0xd2   :  { %v161_v39 = vpop.f32.mrf.mxu0  ;;  %v181_v40 = vpop.f32.mrf.mxu1 }
  0xd3   :  { %194 = vst.msk [vmem:[#allocation2 + $0x18] sm:$0xff] %vm190_vm2, %v167_v37  ;;  %198 = vst.msk [vmem:[#allocation2 + $0x38] sm:$0xff] %vm190_vm2, %v187_v38  ;;  %v162_v41 = vadd.f32 %v494_v26, %v161_v39  ;;  %v182_v42 = vadd.f32 %v494_v26, %v181_v40 }
  0xd5   :  { %193 = vst.msk [vmem:[#allocation2 + $0x10] sm:$0xff] %vm190_vm2, %v162_v41  ;;  %197 = vst.msk [vmem:[#allocation2 + $0x30] sm:$0xff] %vm190_vm2, %v182_v42  ;;  %v585_v45 = vpop.f32.mrf.mxu1  ;;  %v601_v46 = vpop.f32.mrf.mxu0 }
  0xd6   :  { %v282_v47 = vadd.f32 %v585_v45, %v503_v43  ;;  %v429_v48 = vadd.f32 %v601_v46, %v512_v44 }
  0xd7   :  { %633 = shalt.err (!%p630_p4)
}
  0xd8   :  { %s645_s5 = smov 128   ;;  %s646_s0 = smov 8   ;;  %v276_v49 = vpop.f32.mrf.mxu1  ;;  %v423_v50 = vpop.f32.mrf.mxu0  ;;  %316 = vst.msk [vmem:[%s897_s9 + $0x8] sm:$0xff] %vm60_vm0, %v282_v47  ;;  %463 = vst.msk [vmem:[%s898_s10 + $0x8] sm:$0xff] %vm60_vm0, %v429_v48 }
  0xd9   :  { %481 = dma.vmem_to_hbm [thread:$0]  %s476_s22, 1024, %s896_s8, [#allocation3], %s645_s5, %s645_s5, %s646_s0   ;;  %v277_v51 = vadd.f32 %v503_v43, %v276_v49  ;;  %v424_v52 = vadd.f32 %v512_v44, %v423_v50 }
  0xda   :  { %v588_v53 = vpop.f32.mrf.mxu1  ;;  %v604_v54 = vpop.f32.mrf.mxu0 }
  0xdb   :  { %315 = vst.msk [vmem:[%s897_s9] sm:$0xff] %vm60_vm0, %v277_v51  ;;  %462 = vst.msk [vmem:[%s898_s10] sm:$0xff] %vm60_vm0, %v424_v52  ;;  %v292_v55 = vadd.f32 %v588_v53, %v503_v43  ;;  %v439_v56 = vadd.f32 %v604_v54, %v512_v44 }
  0xdc   :  { %v286_v57 = vpop.f32.mrf.mxu1  ;;  %v433_v58 = vpop.f32.mrf.mxu0 }
  0xdd   :  { %318 = vst.msk [vmem:[%s897_s9 + $0x18] sm:$0xff] %vm60_vm0, %v292_v55  ;;  %465 = vst.msk [vmem:[%s898_s10 + $0x18] sm:$0xff] %vm60_vm0, %v439_v56  ;;  %v287_v59 = vadd.f32 %v503_v43, %v286_v57  ;;  %v434_v60 = vadd.f32 %v512_v44, %v433_v58 }
  0xde   :  { %v591_v61 = vpop.f32.mrf.mxu1  ;;  %v607_v62 = vpop.f32.mrf.mxu0 }
  0xdf   :  { %317 = vst.msk [vmem:[%s897_s9 + $0x10] sm:$0xff] %vm60_vm0, %v287_v59  ;;  %464 = vst.msk [vmem:[%s898_s10 + $0x10] sm:$0xff] %vm60_vm0, %v434_v60  ;;  %v302_v63 = vadd.f32 %v591_v61, %v503_v43  ;;  %v449_v0 = vadd.f32 %v607_v62, %v512_v44 }
  0xe0   :  { %v296_v1 = vpop.f32.mrf.mxu1  ;;  %v443_v2 = vpop.f32.mrf.mxu0 }
  0xe1   :  { %320 = vst.msk [vmem:[%s897_s9 + $0x28] sm:$0xff] %vm60_vm0, %v302_v63  ;;  %467 = vst.msk [vmem:[%s898_s10 + $0x28] sm:$0xff] %vm60_vm0, %v449_v0  ;;  %v297_v3 = vadd.f32 %v503_v43, %v296_v1  ;;  %v444_v4 = vadd.f32 %v512_v44, %v443_v2 }
  0xe2   :  { %v594_v5 = vpop.f32.mrf.mxu1  ;;  %v610_v6 = vpop.f32.mrf.mxu0 }
  0xe3   :  { %319 = vst.msk [vmem:[%s897_s9 + $0x20] sm:$0xff] %vm60_vm0, %v297_v3  ;;  %466 = vst.msk [vmem:[%s898_s10 + $0x20] sm:$0xff] %vm60_vm0, %v444_v4  ;;  %v312_v7 = vadd.f32 %v594_v5, %v503_v43  ;;  %v459_v8 = vadd.f32 %v610_v6, %v512_v44 }
  0xe4   :  { %v306_v9 = vpop.f32.mrf.mxu1  ;;  %v453_v10 = vpop.f32.mrf.mxu0 }
  0xe5   :  { %322 = vst.msk [vmem:[%s897_s9 + $0x38] sm:$0xff] %vm60_vm0, %v312_v7  ;;  %469 = vst.msk [vmem:[%s898_s10 + $0x38] sm:$0xff] %vm60_vm0, %v459_v8  ;;  %v307_v11 = vadd.f32 %v503_v43, %v306_v9  ;;  %v454_v12 = vadd.f32 %v512_v44, %v453_v10 }
  0xe7   :  { %321 = vst.msk [vmem:[%s897_s9 + $0x30] sm:$0xff] %vm60_vm0, %v307_v11  ;;  %468 = vst.msk [vmem:[%s898_s10 + $0x30] sm:$0xff] %vm60_vm0, %v454_v12 }
  0xe8   :  { %642 = dma.done.wait [#allocation3], 1024  }
  0xe9   :  { %643 = vsyncadd [#allocation3], 4294966272 }
  0xea   :  { %493 = vsyncpa [#allocation3], 1 }

</bundles_post_ra>
